<compile_context>
chip_gen: v7x
topology: tpu7x:2x2x1
jax: 0.10.0
libtpu: 0.0.40
codegen_flags: <defaults>
</compile_context>

<pallas_src>
import functools
import math

import jax
import jax.numpy as jnp
from jax import lax
from jax.experimental import pallas as pl
from jax.experimental.pallas import tpu as pltpu


def _round_up(v, m):
    return ((v + m - 1) // m) * m


# ---------------------------------------------------------------------------
# Kernel 1: L2-normalize rows, fold 1/sqrt(|temperature|) into the operand,
#           cast to the MXU compute dtype, and lay both halves into one slab.
# ---------------------------------------------------------------------------
def _prep_kernel(x0_ref, x1_ref, o_ref, *, scale):
    # x0_ref/x1_ref: (TM, D) input tiles; o_ref: (2, TM, D) output tile.
    for h, ref in enumerate((x0_ref, x1_ref)):
        x = ref[...].astype(jnp.float32)
        ssq = jnp.sum(x * x, axis=1, keepdims=True)
        # torch.nn.functional.normalize: x / max(||x||, 1e-12)
        inv = lax.rsqrt(jnp.maximum(ssq, jnp.float32(1e-24))) * jnp.float32(scale)
        o_ref[h] = (x * inv).astype(o_ref.dtype)


# ---------------------------------------------------------------------------
# Kernel 2: tiled online-LSE NT-Xent loss.
# ---------------------------------------------------------------------------
def _ntxent_tile_kernel(xr_ref, xc_ref, xp_ref, loss_ref, m_sc, l_sc, pos_sc, *,
                        b_valid, b_pad, block_m, block_k, parameter_neg, sign_t):
    i = pl.program_id(0)          # row-tile index   (parallel)
    k = pl.program_id(1)          # column-tile index (arbitrary / reduction)
    neg_big = jnp.float32(-1e30)

    @pl.when(k == 0)
    def _init():
        m_sc[...] = jnp.full_like(m_sc, neg_big)
        l_sc[...] = jnp.zeros_like(l_sc)
        # Positive logit as a direct pair dot with the partner row tile.
        # Operands already carry the 1/sqrt(|T|) factor, so this is sim/|T|.
        xr = xr_ref[...].astype(jnp.float32)
        xp = xp_ref[...].astype(jnp.float32)
        pair = jnp.sum(xr * xp, axis=1, keepdims=True)
        if sign_t != 1.0:
            pair = pair * jnp.float32(sign_t)
        pos_sc[...] = pair + jnp.float32(parameter_neg)

    # (TM, TK) logits tile on the MXU, f32 accumulate, no explicit transpose.
    s = lax.dot_general(xr_ref[...], xc_ref[...],
                        dimension_numbers=(((1,), (1,)), ((), ())),
                        preferred_element_type=jnp.float32)
    if sign_t != 1.0:
        s = s * jnp.float32(sign_t)

    # Per-tile index masks (O(TM*TK), never a full (N, N) iota).
    row_g = i * block_m + lax.broadcasted_iota(jnp.int32, (block_m, block_k), 0)
    col_g = k * block_k + lax.broadcasted_iota(jnp.int32, (block_m, block_k), 1)
    pos_col = jnp.where(row_g < b_pad, row_g + b_pad, row_g - b_pad)
    is_pos = col_g == pos_col
    drop = row_g == col_g                      # the diagonal is not a logit
    if b_valid != b_pad:                       # static: mask padded columns
        col_valid = jnp.where(col_g < b_pad,
                              col_g < b_valid,
                              col_g < b_pad + b_valid)
        drop = drop | jnp.logical_not(col_valid)

    # parameter_neg boosts the positive column inside the softmax support.
    s = jnp.where(is_pos, s + jnp.float32(parameter_neg), s)
    s = jnp.where(drop, neg_big, s)

    # Online logsumexp update.
    m_prev = m_sc[...]
    m_new = jnp.maximum(m_prev, jnp.max(s, axis=1, keepdims=True))
    l_sc[...] = (jnp.exp(m_prev - m_new) * l_sc[...]
                 + jnp.sum(jnp.exp(s - m_new), axis=1, keepdims=True))
    m_sc[...] = m_new

    @pl.when(k == pl.num_programs(1) - 1)
    def _finalize():
        # per-row cross-entropy: lse - boosted positive logit
        loss_ref[...] = m_sc[...] + jnp.log(l_sc[...]) - pos_sc[...]


# ---------------------------------------------------------------------------
# Wrapper reproducing NTXentLossWithP(memory_bank_size=0).forward(out0, out1)
# ---------------------------------------------------------------------------
def ntxent_loss_with_p(out0, out1, *, temperature=0.5, parameter_neg=1,
                       compute_dtype=jnp.bfloat16, block_m=256, block_k=512):
    # TODO(synk): memory-bank (MoCo) negatives path not implemented — module
    #             default is memory_bank_size=0 (SimCLR path) which is covered.
    if abs(float(temperature)) < 1e-8:
        raise ValueError(f"Illegal temperature: abs({temperature}) < 1e-8")
    if out0.shape != out1.shape:
        raise ValueError("out0 and out1 must have the same shape")
    b, d = out0.shape

    # --- tile sizes: row tile multiple of 8; column tile divides padded width
    tm = max(8, min(int(block_m), _round_up(b, 8)))
    tm -= tm % 8
    b_pad = _round_up(b, tm)           # each half padded to a multiple of TM
    n_pad = 2 * b_pad
    tk = tm
    while tk * 2 <= min(int(block_k), n_pad) and n_pad % (tk * 2) == 0:
        tk *= 2

    sign_t = 1.0 if float(temperature) > 0.0 else -1.0
    scale = 1.0 / math.sqrt(abs(float(temperature)))   # folded into operands

    x0, x1 = out0, out1
    if b_pad != b:
        pad = ((0, b_pad - b), (0, 0))
        x0 = jnp.pad(x0, pad)
        x1 = jnp.pad(x1, pad)

    # --- kernel 1: normalize + scale + cast; output slab acts as the concat ---
    xn2 = pl.pallas_call(
        functools.partial(_prep_kernel, scale=scale),
        out_shape=jax.ShapeDtypeStruct((2, b_pad, d), compute_dtype),
        grid_spec=pltpu.PrefetchScalarGridSpec(
            num_scalar_prefetch=0,
            grid=(b_pad // tm,),
            in_specs=[pl.BlockSpec((tm, d), lambda j: (j, 0)),
                      pl.BlockSpec((tm, d), lambda j: (j, 0))],
            out_specs=pl.BlockSpec((2, tm, d), lambda j: (0, j, 0)),
        ),
        compiler_params=pltpu.CompilerParams(dimension_semantics=("parallel",)),
    )(x0, x1)
    xn = xn2.reshape(n_pad, d)         # contiguous reshape, no copy

    # --- kernel 2: tiled online-LSE loss ---
    nb = b_pad // tm                   # row tiles per half
    n_i = n_pad // tm
    n_k = n_pad // tk

    kernel = functools.partial(
        _ntxent_tile_kernel,
        b_valid=b, b_pad=b_pad, block_m=tm, block_k=tk,
        parameter_neg=float(parameter_neg), sign_t=sign_t)

    loss_rows = pl.pallas_call(
        kernel,
        out_shape=jax.ShapeDtypeStruct((n_pad, 1), jnp.float32),
        grid_spec=pltpu.PrefetchScalarGridSpec(
            num_scalar_prefetch=0,
            grid=(n_i, n_k),
            in_specs=[
                pl.BlockSpec((tm, d), lambda i, k: (i, 0)),                    # rows
                pl.BlockSpec((tk, d), lambda i, k: (k, 0)),                    # cols
                pl.BlockSpec((tm, d), lambda i, k: ((i + nb) % (2 * nb), 0)),  # partner
            ],
            out_specs=pl.BlockSpec((tm, 1), lambda i, k: (i, 0)),
            scratch_shapes=[pltpu.VMEM((tm, 1), jnp.float32)] * 3,   # m, l, pos
        ),
        compiler_params=pltpu.CompilerParams(
            dimension_semantics=("parallel", "arbitrary")),
    )(xn, xn, xn)

    # mean over the 2B valid rows (padding rows are sliced away)
    per_row = loss_rows[:, 0]
    total = jnp.sum(per_row[:b]) + jnp.sum(per_row[b_pad:b_pad + b])
    return total / jnp.float32(2 * b)


# ---------------------------------------------------------------------------
# Pure-JAX reference mirroring the PyTorch forward (sanity check only).
# ---------------------------------------------------------------------------
def _reference_jax(out0, out1, temperature=0.5, parameter_neg=1):
    b, _ = out0.shape
    x0 = out0 / jnp.maximum(jnp.linalg.norm(out0, axis=1, keepdims=True), 1e-12)
    x1 = out1 / jnp.maximum(jnp.linalg.norm(out1, axis=1, keepdims=True), 1e-12)
    out = jnp.concatenate([x0, x1], axis=0)
    logits = jnp.einsum("nc,mc->nm", out, out) / temperature
    n = 2 * b
    keep = ~jnp.eye(n, dtype=bool)
    logits = logits[keep].reshape(n, n - 1)
    labels = jnp.concatenate([jnp.arange(b) + b - 1, jnp.arange(b)])
    logits = logits.at[jnp.arange(n), labels].add(float(parameter_neg))
    logz = jax.nn.logsumexp(logits, axis=1)
    return jnp.mean(logz - logits[jnp.arange(n), labels])


if __name__ == "__main__":
    key = jax.random.PRNGKey(0)
    k0, k1, k2, k3 = jax.random.split(key, 4)

    # Case 1: small aligned batch, f32 MXU operands -> tight check.
    b, dim = 8, 32
    a0 = jax.random.normal(k0, (b, dim), dtype=jnp.float32)
    a1 = jax.random.normal(k1, (b, dim), dtype=jnp.float32)
    loss_f32 = jax.block_until_ready(
        ntxent_loss_with_p(a0, a1, temperature=0.5, parameter_neg=1,
                           compute_dtype=jnp.float32))
    ref = _reference_jax(a0, a1, 0.5, 1)
    assert jnp.allclose(loss_f32, ref, atol=1e-4, rtol=1e-4), (loss_f32, ref)

    # Case 2: default bf16 MXU operands (fast path on v6e/v7x) -> looser check.
    loss_bf16 = jax.block_until_ready(
        ntxent_loss_with_p(a0, a1, temperature=0.5, parameter_neg=1))
    assert jnp.allclose(loss_bf16, ref, atol=5e-2, rtol=5e-2), (loss_bf16, ref)

    # Case 3: unaligned batch + multi-tile grid (exercises padding masks and
    #         the online-LSE accumulation across column tiles).
    b2, d2 = 13, 32
    c0 = jax.random.normal(k2, (b2, d2), dtype=jnp.float32)
    c1 = jax.random.normal(k3, (b2, d2), dtype=jnp.float32)
    loss2 = jax.block_until_ready(
        ntxent_loss_with_p(c0, c1, temperature=0.7, parameter_neg=2,
                           compute_dtype=jnp.float32, block_m=8, block_k=16))
    ref2 = _reference_jax(c0, c1, 0.7, 2)
    assert jnp.allclose(loss2, ref2, atol=1e-4, rtol=1e-4), (loss2, ref2)

    print("KERNEL_OK")
</pallas_src>

<mosaic_0001>
module attributes {stable_mosaic.version = 11 : i64} {
  func.func @_prep_kernel(%arg0: i32, %arg1: memref<8x32xf32, #tpu.memory_space<vmem>>, %arg2: memref<8x32xf32, #tpu.memory_space<vmem>>, %arg3: memref<2x8x32xf32, #tpu.memory_space<vmem>>) attributes {dimension_semantics = [#tpu.dimension_semantics<parallel>], iteration_bounds = array<i64: 1>, scalar_prefetch = 0 : i64, scratch_operands = 0 : i64, tpu.core_type = #tpu.core_type<tc>, window_params = [{transform_indices = @transform_0, window_bounds = array<i64: 8, 32>}, {transform_indices = @transform_1, window_bounds = array<i64: 8, 32>}, {transform_indices = @transform_2, window_bounds = array<i64: 2, 8, 32>}]} {
    %c0 = arith.constant 0 : index
    %c0_0 = arith.constant 0 : index
    %0 = vector.load %arg1[%c0, %c0_0] : memref<8x32xf32, #tpu.memory_space<vmem>>, vector<8x32xf32>
    %1 = arith.mulf %0, %0 : vector<8x32xf32>
    %cst = arith.constant dense<0.000000e+00> : vector<8xf32>
    %2 = vector.multi_reduction <add>, %1, %cst [1] : vector<8x32xf32> to vector<8xf32>
    %3 = vector.shape_cast %2 : vector<8xf32> to vector<8x1xf32>
    %cst_1 = arith.constant 1.000000e-24 : f32
    %4 = vector.broadcast %cst_1 : f32 to vector<8x1xf32>
    %5 = arith.maximumf %3, %4 : vector<8x1xf32>
    %6 = math.rsqrt %5 : vector<8x1xf32>
    %cst_2 = arith.constant 1.41421354 : f32
    %7 = vector.broadcast %cst_2 : f32 to vector<8x1xf32>
    %8 = arith.mulf %6, %7 : vector<8x1xf32>
    %9 = vector.broadcast %8 : vector<8x1xf32> to vector<8x32xf32>
    %10 = arith.mulf %0, %9 : vector<8x32xf32>
    %c0_3 = arith.constant 0 : index
    %c0_4 = arith.constant 0 : index
    %c0_5 = arith.constant 0 : index
    %11 = vector.load %arg3[%c0_3, %c0_4, %c0_5] : memref<2x8x32xf32, #tpu.memory_space<vmem>>, vector<1x8x32xf32>
    %12 = vector.shape_cast %11 : vector<1x8x32xf32> to vector<8x32xf32>
    %13 = vector.shape_cast %10 : vector<8x32xf32> to vector<1x8x32xf32>
    tpu.vector_store %arg3[%c0_3, %c0_4, %c0_5], %13 {strides = array<i32>} : memref<2x8x32xf32, #tpu.memory_space<vmem>>, vector<1x8x32xf32>,
    %c0_6 = arith.constant 0 : index
    %c0_7 = arith.constant 0 : index
    %14 = vector.load %arg2[%c0_6, %c0_7] : memref<8x32xf32, #tpu.memory_space<vmem>>, vector<8x32xf32>
    %15 = arith.mulf %14, %14 : vector<8x32xf32>
    %cst_8 = arith.constant dense<0.000000e+00> : vector<8xf32>
    %16 = vector.multi_reduction <add>, %15, %cst_8 [1] : vector<8x32xf32> to vector<8xf32>
    %17 = vector.shape_cast %16 : vector<8xf32> to vector<8x1xf32>
    %cst_9 = arith.constant 1.000000e-24 : f32
    %18 = vector.broadcast %cst_9 : f32 to vector<8x1xf32>
    %19 = arith.maximumf %17, %18 : vector<8x1xf32>
    %20 = math.rsqrt %19 : vector<8x1xf32>
    %cst_10 = arith.constant 1.41421354 : f32
    %21 = vector.broadcast %cst_10 : f32 to vector<8x1xf32>
    %22 = arith.mulf %20, %21 : vector<8x1xf32>
    %23 = vector.broadcast %22 : vector<8x1xf32> to vector<8x32xf32>
    %24 = arith.mulf %14, %23 : vector<8x32xf32>
    %c1 = arith.constant 1 : index
    %c0_11 = arith.constant 0 : index
    %c0_12 = arith.constant 0 : index
    %25 = vector.load %arg3[%c1, %c0_11, %c0_12] : memref<2x8x32xf32, #tpu.memory_space<vmem>>, vector<1x8x32xf32>
    %26 = vector.shape_cast %25 : vector<1x8x32xf32> to vector<8x32xf32>
    %27 = vector.shape_cast %24 : vector<8x32xf32> to vector<1x8x32xf32>
    tpu.vector_store %arg3[%c1, %c0_11, %c0_12], %27 {strides = array<i32>} : memref<2x8x32xf32, #tpu.memory_space<vmem>>, vector<1x8x32xf32>,
    return
  }
  func.func @transform_0(%arg0: i32) -> (i32, i32) {
    %c0_i32 = arith.constant 0 : i32
    %c0_i32_0 = arith.constant 0 : i32
    return %arg0, %c0_i32 : i32, i32
  }
  func.func @transform_1(%arg0: i32) -> (i32, i32) {
    %c0_i32 = arith.constant 0 : i32
    %c0_i32_0 = arith.constant 0 : i32
    return %arg0, %c0_i32 : i32, i32
  }
  func.func @transform_2(%arg0: i32) -> (i32, i32, i32) {
    %c0_i32 = arith.constant 0 : i32
    %c0_i32_0 = arith.constant 0 : i32
    %c0_i32_1 = arith.constant 0 : i32
    return %c0_i32, %arg0, %c0_i32_0 : i32, i32, i32
  }
}

</mosaic_0001>

<bundles_post_ra>
// kernel: tpu_custom_call.1
= control target key start
LH: loop header
LB: loop body
LE: loop exit
PB: predicated region body
PF: predicated region fallthrough
CT: control target
= control target key end

     0   :  { %7 = vsyncpa [#allocation3], 0  ;;  %s217_s0 = inlined_call_operand.hbm [shape: f32[8,32], index: 0, kind: input, shape index: {}]   ;;  %s218_s1 = inlined_call_operand.hbm [shape: f32[8,32], index: 1, kind: input, shape index: {}]   ;;  %s219_s2 = inlined_call_operand.hbm [shape: f32[2,8,32], index: 2, kind: output, shape index: {}]  }
   0x1   :  { %8 = vsyncpa [#allocation6], 0 }
   0x2   :  { %9 = vsyncpa [#allocation4], 0  ;;  %s157_s9 = smov [#allocation2]   ;;  %s158_s11 = smov [#allocation5]  }
   0x3   :  { %s16_s10 = sshll.u32 %s157_s9, 4  ;;  %s26_s12 = sshll.u32 %s158_s11, 4  ;;  %s17_s10 = int_to_ptr.vmem [resolvable:$true] %s16_s10  ;;  %s27_s12 = int_to_ptr.vmem [resolvable:$true] %s26_s12 }
   0x4   :  { %s85_s15 = scalar_lea.hbm %s217_s0, 128 }
   0x5   :  { %p86_p0 = scmp.ne.s32.totalorder %s217_s0, %s85_s15  ;;  %p89_p1 = scmp.lt.u32.totalorder %s85_s15, %s217_s0 }
   0x7   :  { %p91_p2 = pnand %p89_p1, %p86_p0 }
   0x9   :  { %94 = shalt.err (!%p91_p2)
}
   0xa   :  { %s95_s20 = scalar_lea.vmem %s17_s10, 128  ;;  %p100_p4 = scmp.lt.s32.totalorder %s17_s10, %s17_s10 }
   0xb   :  { %p96_p3 = scmp.ne.s32.totalorder %s17_s10, %s95_s20  ;;  %p101_p5 = scmp.lt.s32.totalorder %s95_s20, %s95_s20 }
   0xd   :  { %p102_p6 = por %p101_p5, %p100_p4 }
   0xf   :  { %p103_p7 = pnand %p102_p6, %p96_p3 }
  0x11   :  { %106 = shalt.err (!%p103_p7)
}
  0x12   :  { %19 = dma.hbm_to_vmem [thread:$0]  %s217_s0, 128, %s17_s10, [#allocation3]  }
  0x13   :  { %s107_s25 = scalar_lea.hbm %s218_s1, 128 }
  0x14   :  { %p108_p8 = scmp.ne.s32.totalorder %s218_s1, %s107_s25  ;;  %p111_p9 = scmp.lt.u32.totalorder %s107_s25, %s218_s1 }
  0x16   :  { %p113_p10 = pnand %p111_p9, %p108_p8 }
  0x18   :  { %116 = shalt.err (!%p113_p10)
}
  0x19   :  { %s117_s30 = scalar_lea.vmem %s27_s12, 128  ;;  %p122_p12 = scmp.lt.s32.totalorder %s27_s12, %s27_s12 }
  0x1a   :  { %p118_p11 = scmp.ne.s32.totalorder %s27_s12, %s117_s30  ;;  %p123_p13 = scmp.lt.s32.totalorder %s117_s30, %s117_s30 }
  0x1c   :  { %p124_p0 = por %p123_p13, %p122_p12 }
  0x1e   :  { %p125_p1 = pnand %p124_p0, %p118_p11 }
  0x20   :  { %128 = shalt.err (!%p125_p1)
}
  0x21   :  { %29 = dma.hbm_to_vmem [thread:$0]  %s218_s1, 128, %s27_s12, [#allocation6]  }
  0x22   :  { %151 = dma.done.wait [#allocation3], 128  }
  0x23   :  { %152 = vsyncadd [#allocation3], 4294967168 }
  0x24   :  { %153 = dma.done.wait [#allocation6], 128  }
  0x25   :  { %154 = vsyncadd [#allocation6], 4294967168  ;;  %v36_v0 = vld [vmem:[#allocation2] sm:$0xff]  ;;  %vm38_vm0 = vcmask 261120   ;;  %v47_v1 = vld [vmem:[#allocation5] sm:$0xff]  ;;  %s159_s1 = smov [#allocation7]  }
  0x26   :  { %v37_v2 = vmul.f32 %v36_v0, %v36_v0  ;;  %v48_v3 = vmul.f32 %v47_v1, %v47_v1  ;;  %s63_s4 = sshll.u32 %s159_s1, 4  ;;  %s64_s4 = int_to_ptr.vmem [resolvable:$true] %s63_s4 }
  0x27   :  { %s129_s5 = scalar_lea.vmem %s64_s4, 256  ;;  %p134_p3 = scmp.lt.s32.totalorder %s64_s4, %s64_s4 }
  0x28   :  { %v39_v4 = vsel %vm38_vm0, %v37_v2, 0.0  ;;  %v49_v5 = vsel %vm38_vm0, %v48_v3, 0.0  ;;  %p130_p2 = scmp.ne.s32.totalorder %s64_s4, %s129_s5  ;;  %p135_p4 = scmp.lt.s32.totalorder %s129_s5, %s129_s5 }
  0x29   :  { %40 = vadd.xlane.f32.xlu0 %v39_v4 }
  0x2a   :  { %p136_p5 = por %p135_p4, %p134_p3 }
  0x2c   :  { %p137_p6 = pnand %p136_p5, %p130_p2 }
  0x2d   :  { %50 = vadd.xlane.f32.xlu0 %v49_v5 }
  0xb6   :  { %v41_v6 = vpop.xlane.xlu0 %40 }
  0xb7   :  { %v42_v7 = vmax.f32 %v41_v6, 1e-24 }
  0xb9   :  { %81 = vrsqrt.f32 %v42_v7 }
  0xba   :  { %v51_v8 = vpop.xlane.xlu0 %50 }
  0xbb   :  { %v52_v9 = vmax.f32 %v51_v8, 1e-24 }
  0xbd   :  { %83 = vrsqrt.f32 %v52_v9 }
  0xc3   :  { %v82_v10 = vpop.eup %81 }
  0xc4   :  { %v44_v11 = vmul.f32 1.4142135, %v82_v10 }
  0xc6   :  { %v45_v12 = vmul.f32 %v44_v11, %v36_v0 }
  0xc7   :  { %v84_v13 = vpop.eup %83 }
  0xc8   :  { %46 = vst.msk [vmem:[#allocation7] sm:$0xff] %vm38_vm0, %v45_v12  ;;  %v54_v14 = vmul.f32 1.4142135, %v84_v13 }
  0xca   :  { %v55_v15 = vmul.f32 %v54_v14, %v47_v1 }
  0xcc   :  { %57 = vst.msk [vmem:[#allocation7 + $0x8] sm:$0xff] %vm38_vm0, %v55_v15 }
  0xcd   :  { %140 = shalt.err (!%p137_p6)
}
  0xce   :  { %s141_s8 = scalar_lea.hbm %s219_s2, 256 }
  0xcf   :  { %p142_p7 = scmp.ne.s32.totalorder %s219_s2, %s141_s8  ;;  %p145_p8 = scmp.lt.u32.totalorder %s141_s8, %s219_s2 }
  0xd1   :  { %p147_p9 = pnand %p145_p8, %p142_p7 }
  0xd3   :  { %150 = shalt.err (!%p147_p9)
}
  0xd4   :  { %s160_s13 = smov 128   ;;  %s161_s14 = smov 8  }
  0xd5   :  { %69 = dma.vmem_to_hbm [thread:$0]  %s64_s4, 256, %s219_s2, [#allocation4], %s160_s13, %s160_s13, %s161_s14  }
  0xd6   :  { %155 = dma.done.wait [#allocation4], 256  }
  0xd7   :  { %156 = vsyncadd [#allocation4], 4294967040 }
  0xd8   :  { %73 = vsyncpa [#allocation3], 1 }
  0xd9   :  { %74 = vsyncpa [#allocation6], 1 }
  0xda   :  { %75 = vsyncpa [#allocation4], 1 }

</bundles_post_ra>
